<compile_context>
chip_gen: v5e
topology: v5e:2x2
jax: 0.10.0
libtpu: 0.0.40
codegen_flags: <defaults>
</compile_context>

<pallas_src>
import jax
import jax.numpy as jnp
from jax.experimental import pallas as pl
from jax.experimental.pallas import tpu as pltpu

_LANES = 128


def _expdive_kernel(x_ref, o_ref):
    x = x_ref[...]
    # Two exp pushes on the EUP, one subtract on the VPU; memory-bound on all
    # generations (EUP can bind only for f32 on v7x if the grid lands on one
    # TC -- the parallel grid below avoids that). Compute stays in input dtype.
    o_ref[...] = jnp.exp(x) - jnp.exp(-x)


def _sublane_unit(itemsize: int) -> int:
    # Native packed tiles: f32 (8,128), bf16 (16,128), int8/fp8 (32,128).
    return max(8, 8 * (4 // max(1, itemsize)))


def _default_block_bytes() -> int:
    # Generation-aware block size (per buffer).
    try:
        kind = jax.devices()[0].device_kind.lower()
    except Exception:
        return 2 << 20
    if "v7" in kind or "v6" in kind:
        return 4 << 20  # 16 MiB live (2 bufs x (in+out)) < 32 MiB scoped default
    return 2 << 20      # v5e: 8 MiB live < 16 MiB scoped default


def exp_dive(
    x: jax.Array,
    *,
    block_bytes: int | None = None,
    min_pallas_elems: int = 1 << 15,     # below this, fused XLA is as fast
) -> jax.Array:
    """Elementwise exp(x) - exp(-x) via a Pallas TPU kernel."""
    orig_shape = x.shape
    orig_dtype = x.dtype
    total = x.size

    # Small-tensor fast path: pallas_call + DMA setup overhead dominates.
    if total == 0 or total < min_pallas_elems:
        return jnp.exp(x) - jnp.exp(-x)

    if block_bytes is None:
        block_bytes = _default_block_bytes()

    itemsize = jnp.dtype(orig_dtype).itemsize
    sub = _sublane_unit(itemsize)        # dtype-aware sublane unit
    unit = _LANES * sub                  # one packed (sub, 128) tile

    flat = x.reshape(-1)
    padded = pl.cdiv(total, unit) * unit
    needs_pad = padded != total
    if needs_pad:
        # TODO(synk): ragged sizes pay ~2 extra full HBM passes (pad + slice),
        # ~1/3 of roofline; if ragged shapes become common, switch to a
        # masked-tail-store kernel with the true length scalar-prefetched.
        flat = jnp.pad(flat, (0, padded - total))

    rows = padded // _LANES              # multiple of `sub`

    # Target block: ~block_bytes worth of rows, rounded to the packed unit.
    tile_rows = max(sub, (block_bytes // (_LANES * itemsize)) // sub * sub)
    # Keep >= ~8 grid steps on mid-size tensors (both v7x TCs stream and each
    # still double-buffers), but never shrink a block below ~256 KiB.
    min_rows = max(sub, ((256 << 10) // (_LANES * itemsize)) // sub * sub)
    cap_rows = max(min_rows, (rows // 8) // sub * sub)
    block_rows = min(tile_rows, cap_rows, rows)
    grid = (pl.cdiv(rows, block_rows),)  # ragged last block handled by Pallas

    x2d = flat.reshape(rows, _LANES)     # metadata-only when not padded

    block_bytes_actual = block_rows * _LANES * itemsize
    out2d = pl.pallas_call(
        _expdive_kernel,
        out_shape=jax.ShapeDtypeStruct((rows, _LANES), orig_dtype),
        grid_spec=pltpu.PrefetchScalarGridSpec(
            num_scalar_prefetch=0,
            grid=grid,
            in_specs=[pl.BlockSpec((block_rows, _LANES), lambda i: (i, 0))],
            out_specs=pl.BlockSpec((block_rows, _LANES), lambda i: (i, 0)),
        ),
        compiler_params=pltpu.CompilerParams(
            # "parallel" so v7x shards the grid across both TensorCores.
            dimension_semantics=("parallel",),
            # 2 buffers x (in + out) x block, plus headroom for Mosaic scratch.
            vmem_limit_bytes=int(4 * block_bytes_actual + (4 << 20)),
        ),
        cost_estimate=pl.CostEstimate(
            flops=padded,
            transcendentals=2 * padded,
            bytes_accessed=2 * padded * itemsize,
        ),
    )(x2d)

    if needs_pad:
        return out2d.reshape(-1)[:total].reshape(orig_shape)
    return out2d.reshape(orig_shape)     # metadata-only, no extra HBM pass


if __name__ == "__main__":
    key = jax.random.PRNGKey(0)

    # f32 NCHW-like input whose size is a multiple of the f32 (8,128) unit
    # -> zero-copy reshape path. min_pallas_elems=0 forces the Pallas path.
    x = jax.random.normal(key, (2, 4, 16, 16), dtype=jnp.float32)
    out = jax.block_until_ready(exp_dive(x, min_pallas_elems=0))
    ref = jnp.exp(x) - jnp.exp(-x)
    assert out.shape == x.shape and out.dtype == x.dtype
    assert jnp.allclose(out, ref, atol=1e-5, rtol=1e-5)

    # Ragged size (not a multiple of 1024) exercises the minimal-pad path.
    x2 = jax.random.normal(jax.random.PRNGKey(0), (2, 4, 17, 15),
                           dtype=jnp.float32)
    out2 = jax.block_until_ready(exp_dive(x2, min_pallas_elems=0))
    ref2 = jnp.exp(x2) - jnp.exp(-x2)
    assert out2.shape == x2.shape and out2.dtype == x2.dtype
    assert jnp.allclose(out2, ref2, atol=1e-5, rtol=1e-5)

    # bf16 exercises the dtype-aware (16,128) packed sublane unit.
    x3 = jax.random.normal(jax.random.PRNGKey(0), (2, 4, 16, 16),
                           dtype=jnp.bfloat16)
    out3 = jax.block_until_ready(exp_dive(x3, min_pallas_elems=0))
    ref3 = jnp.exp(x3) - jnp.exp(-x3)
    assert out3.shape == x3.shape and out3.dtype == x3.dtype
    assert jnp.allclose(out3.astype(jnp.float32), ref3.astype(jnp.float32),
                        atol=2e-2, rtol=2e-2)

    print("KERNEL_OK")
</pallas_src>

<mosaic_0001>
module attributes {stable_mosaic.version = 11 : i64} {
  func.func @_expdive_kernel(%arg0: i32, %arg1: memref<16x128xf32, #tpu.memory_space<vmem>>, %arg2: memref<16x128xf32, #tpu.memory_space<vmem>>) attributes {dimension_semantics = [#tpu.dimension_semantics<parallel>], iteration_bounds = array<i64: 1>, scalar_prefetch = 0 : i64, scratch_operands = 0 : i64, tpu.core_type = #tpu.core_type<tc>, window_params = [{transform_indices = @transform_0, window_bounds = array<i64: 16, 128>}, {transform_indices = @transform_1, window_bounds = array<i64: 16, 128>}]} {
    %c0 = arith.constant 0 : index
    %c0_0 = arith.constant 0 : index
    %0 = vector.load %arg1[%c0, %c0_0] : memref<16x128xf32, #tpu.memory_space<vmem>>, vector<16x128xf32>
    %1 = math.exp %0 : vector<16x128xf32>
    %cst = arith.constant 0.000000e+00 : f32
    %2 = vector.broadcast %cst : f32 to vector<16x128xf32>
    %3 = arith.subf %2, %0 : vector<16x128xf32>
    %4 = math.exp %3 : vector<16x128xf32>
    %5 = arith.subf %1, %4 : vector<16x128xf32>
    %c0_1 = arith.constant 0 : index
    %c0_2 = arith.constant 0 : index
    %6 = vector.load %arg2[%c0_1, %c0_2] : memref<16x128xf32, #tpu.memory_space<vmem>>, vector<16x128xf32>
    tpu.vector_store %arg2[%c0_1, %c0_2], %5 {strides = array<i32>} : memref<16x128xf32, #tpu.memory_space<vmem>>, vector<16x128xf32>,
    return
  }
  func.func @transform_0(%arg0: i32) -> (i32, i32) {
    %c0_i32 = arith.constant 0 : i32
    %c0_i32_0 = arith.constant 0 : i32
    return %arg0, %c0_i32 : i32, i32
  }
  func.func @transform_1(%arg0: i32) -> (i32, i32) {
    %c0_i32 = arith.constant 0 : i32
    %c0_i32_0 = arith.constant 0 : i32
    return %arg0, %c0_i32 : i32, i32
  }
}

</mosaic_0001>

<bundles_post_ra>
// kernel: tpu_custom_call.1
= control target key start
LH: loop header
LB: loop body
LE: loop exit
PB: predicated region body
PF: predicated region fallthrough
CT: control target
= control target key end

     0   :  { %6 = vsyncpa [#allocation3], 0  ;;  %s150_s0 = inlined_call_operand.hbm [shape: f32[16,128], index: 0, kind: input, shape index: {}]   ;;  %s151_s1 = inlined_call_operand.hbm [shape: f32[16,128], index: 1, kind: output, shape index: {}]  }
   0x1   :  { %7 = vsyncpa [#allocation4], 0  ;;  %s12_s8 = sshll.u32 %s150_s0, 4  ;;  %s124_s9 = smov [#allocation2]   ;;  %s13_s8 = int_to_ptr.hbm [resolvable:$true] %s12_s8 }
   0x2   :  { %s14_s10 = sshll.u32 %s124_s9, 4  ;;  %s125_s11 = smov 128   ;;  %s15_s10 = int_to_ptr.vmem [resolvable:$true] %s14_s10 }
   0x3   :  { %s126_s12 = smov 8  }
   0x4   :  { %20 = dma.hbm_to_vmem [thread:$0]  %s13_s8, 256, %s15_s10, [#allocation3], %s125_s11, %s125_s11, %s126_s12  }
   0x5   :  { %120 = dma.done.wait [#allocation3], 256  }
   0x6   :  { %121 = vsyncadd [#allocation3], 4294967040  ;;  %v25_v0 = vld [vmem:[#allocation2] sm:$0xff]  ;;  %v26_v1 = vld [vmem:[#allocation2 + $0x8] sm:$0xff]  ;;  %s127_s0 = smov [#allocation5]   ;;  %s47_s16 = sshll.u32 %s151_s1, 4  ;;  %s48_s16 = int_to_ptr.hbm [resolvable:$true] %s47_s16 }
   0x7   :  { %v27_v2 = vmul.f32 1.442695, %v25_v0  ;;  %v31_v3 = vsub.f32 0.0, %v25_v0  ;;  %v29_v4 = vmul.f32 1.442695, %v26_v1  ;;  %v32_v5 = vsub.f32 0.0, %v26_v1 }
   0x8   :  { %s45_s13 = sshll.u32 %s127_s0, 4  ;;  %s46_s13 = int_to_ptr.vmem [resolvable:$true] %s45_s13 }
   0x9   :  { %64 = vpow2.f32 %v27_v2  ;;  %v33_v6 = vmul.f32 1.442695, %v31_v3  ;;  %v35_v7 = vmul.f32 1.442695, %v32_v5 }
   0xa   :  { %66 = vpow2.f32 %v29_v4 }
   0xb   :  { %68 = vpow2.f32 %v33_v6 }
   0xc   :  { %70 = vpow2.f32 %v35_v7 }
   0xf   :  { %v65_v8 = vpop.eup %64 }
  0x10   :  { %v67_v9 = vpop.eup %66 }
  0x11   :  { %v69_v10 = vpop.eup %68 }
  0x12   :  { %v71_v11 = vpop.eup %70  ;;  %v37_v12 = vsub.f32 %v65_v8, %v69_v10 }
  0x13   :  { %v38_v13 = vsub.f32 %v67_v9, %v71_v11 }
  0x14   :  { %39 = vst [vmem:[#allocation5] sm:$0xff] %v37_v12 }
  0x15   :  { %40 = vst [vmem:[#allocation5 + $0x8] sm:$0xff] %v38_v13 }
  0x16   :  { %53 = dma.vmem_to_hbm [thread:$0]  %s46_s13, 256, %s48_s16, [#allocation4], %s125_s11, %s125_s11, %s126_s12  }
  0x17   :  { %122 = dma.done.wait [#allocation4], 256  }
  0x18   :  { %123 = vsyncadd [#allocation4], 4294967040 }
  0x19   :  { %58 = vsyncpa [#allocation3], 1 }
  0x1a   :  { %59 = vsyncpa [#allocation4], 1 }

</bundles_post_ra>
